<compile_context>
chip_gen: v7x
topology: tpu7x:2x2x1
jax: 0.10.0
libtpu: 0.0.40
codegen_flags: <defaults>
</compile_context>

<pallas_src>
import jax
import jax.numpy as jnp
from jax.experimental import pallas as pl
from jax.experimental.pallas import tpu as pltpu

_LANE = 128


# ----------------------------------------------------------------------------- helpers
def _round_up(v, m):
    return ((v + m - 1) // m) * m


def _vmem_cap_bytes():
    try:
        return int(pltpu.get_tpu_info().vmem_capacity_bytes)
    except Exception:
        return 64 << 20  # conservative default (v7x per-TensorCore VMEM)


def _pick_tile(M, row_bytes_in, row_bytes_out):
    """Pick the M (row) tile and a VMEM limit.

    Bigger tiles amortize the ~0.35us/grid-step overhead and approach the HBM
    roofline (measured: 128-row tiles ~29%, 512-row ~85%), but the
    double-buffered in/out blocks must fit VMEM (v7x: 64 MiB).  Also prefer >=2
    grid blocks when there is enough work so both v7x TensorCores get a share.
    """
    cap = _vmem_cap_bytes()
    budget = int(cap * 0.6)                    # headroom for weights / compiler scratch
    tm = 128
    for cand in (512, 256):
        if 2 * cand * (row_bytes_in + row_bytes_out) <= budget:
            tm = cand
            break
    while tm > 128 and M <= tm and M > 128:    # keep >=2 blocks when possible
        tm //= 2
    if M <= 128:
        tm = max(8, _round_up(M, 8))           # single sublane-aligned block
    vmem_limit = int(min(cap, max(32 << 20,
                                  2 * tm * (row_bytes_in + row_bytes_out) + (8 << 20))))
    return tm, vmem_limit


# ----------------------------------------------------------------------------- kernels
def _mm_bias_kernel(a_ref, w_ref, b_ref, o_ref):
    # a: (tm, Cin*K*K) bf16, w: (Cin*K*K, Npad) bf16, b: (1, Npad) f32
    acc = jnp.dot(a_ref[...], w_ref[...], preferred_element_type=jnp.float32)
    o_ref[...] = (acc + b_ref[...]).astype(o_ref.dtype)


def _dcn_kernel(v00, v01, v10, v11, b00, b01, b10, b11, ml, e_ref, w_ref, o_ref):
    # v*: (tm, Cin*K*K) bf16 corner values, b*/ml: (tm, K*K) f32,
    # e: (K*K, Cin*K*K) f32 0/1 expansion matrix, w: (Cin*K*K, Npad) bf16.
    sig = jax.nn.sigmoid(ml[...])                           # f32, small tile (VPU/EUP)
    e = e_ref[...]

    def ex(b_ref_):
        # lane-expand the per-kernel-point scalar across Cin via a tiny MXU dot
        # (exact: exactly one 1.0 per output column).
        return jnp.dot(b_ref_[...] * sig, e, preferred_element_type=jnp.float32)

    cols = (ex(b00) * v00[...].astype(jnp.float32)
            + ex(b01) * v01[...].astype(jnp.float32)
            + ex(b10) * v10[...].astype(jnp.float32)
            + ex(b11) * v11[...].astype(jnp.float32))       # combine in f32 (v5e-safe)
    o_ref[...] = jnp.dot(cols.astype(jnp.bfloat16), w_ref[...],
                         preferred_element_type=jnp.float32).astype(o_ref.dtype)


# ----------------------------------------------------------------------------- pallas wrappers
def _pallas_matmul_bias(a, w, b):
    M, K = a.shape
    N = w.shape[1]
    Np = _round_up(N, _LANE)                                # lane-dense output / weight
    tm, vmem = _pick_tile(M, K * 2, Np * 4)
    Mp = _round_up(M, tm)

    a_p = jnp.pad(a, ((0, Mp - M), (0, 0))).astype(jnp.bfloat16)
    w_p = jnp.pad(w, ((0, 0), (0, Np - N))).astype(jnp.bfloat16)
    b_p = jnp.pad(b, (0, Np - N)).reshape(1, Np).astype(jnp.float32)

    out = pl.pallas_call(
        _mm_bias_kernel,
        out_shape=jax.ShapeDtypeStruct((Mp, Np), jnp.float32),
        grid=(Mp // tm,),
        in_specs=[
            pl.BlockSpec((tm, K), lambda i: (i, 0)),
            pl.BlockSpec((K, Np), lambda i: (0, 0)),
            pl.BlockSpec((1, Np), lambda i: (0, 0)),
        ],
        out_specs=pl.BlockSpec((tm, Np), lambda i: (i, 0)),
        compiler_params=pltpu.CompilerParams(
            dimension_semantics=("parallel",), vmem_limit_bytes=vmem),
    )(a_p, w_p, b_p)
    return out[:M, :N]


def _pallas_dcn_matmul(corners, bweights, mask_logits, w_flat_t, cin):
    M, CKK = corners[0].shape
    KK = bweights[0].shape[1]
    N = w_flat_t.shape[1]
    Np = _round_up(N, _LANE)

    row_in = 4 * CKK * 2 + 5 * KK * 4       # 4 bf16 value slabs + 5 f32 small slabs
    tm, vmem = _pick_tile(M, row_in, Np * 4)
    Mp = _round_up(M, tm)

    pad_rows = lambda z: jnp.pad(z, ((0, Mp - M), (0, 0)))
    vals = [pad_rows(c).astype(jnp.bfloat16) for c in corners]
    smalls = [pad_rows(b).astype(jnp.float32) for b in bweights] \
             + [pad_rows(mask_logits).astype(jnp.float32)]
    # 0/1 expansion matrix: column c*KK + k picks bilinear weight k (c-outer, k-inner).
    expand_mat = jnp.tile(jnp.eye(KK, dtype=jnp.float32), (1, cin))      # (KK, Cin*KK)
    w_p = jnp.pad(w_flat_t, ((0, 0), (0, Np - N))).astype(jnp.bfloat16)

    val_spec = pl.BlockSpec((tm, CKK), lambda i: (i, 0))
    sm_spec = pl.BlockSpec((tm, KK), lambda i: (i, 0))
    out = pl.pallas_call(
        _dcn_kernel,
        out_shape=jax.ShapeDtypeStruct((Mp, Np), jnp.float32),
        grid=(Mp // tm,),
        in_specs=[val_spec] * 4 + [sm_spec] * 5
                 + [pl.BlockSpec((KK, CKK), lambda i: (0, 0)),
                    pl.BlockSpec((CKK, Np), lambda i: (0, 0))],
        out_specs=pl.BlockSpec((tm, Np), lambda i: (i, 0)),
        compiler_params=pltpu.CompilerParams(
            dimension_semantics=("parallel",), vmem_limit_bytes=vmem),
    )(*vals, *smalls, expand_mat, w_p)
    return out[:M, :N]


# ----------------------------------------------------------------------------- JAX glue
def _im2col(x, K, stride, pad, dil):
    B, C, H, W = x.shape
    Hout = (H + 2 * pad - (dil * (K - 1) + 1)) // stride + 1
    Wout = (W + 2 * pad - (dil * (K - 1) + 1)) // stride + 1
    xp = jnp.pad(x, ((0, 0), (0, 0), (pad, pad), (pad, pad)))
    cols = []
    for kh in range(K):
        for kw in range(K):
            cols.append(xp[:, :,
                           kh * dil: kh * dil + stride * Hout: stride,
                           kw * dil: kw * dil + stride * Wout: stride])
    cols = jnp.stack(cols, axis=2)                      # [B, C, K*K, Hout, Wout]
    cols = cols.transpose(0, 3, 4, 1, 2).reshape(B * Hout * Wout, C * K * K)
    return cols, Hout, Wout


def _build_dcn_columns(x, offset, mask_logits, K, stride, pad, dil):
    """Sampling coords + bilinear corner gathers (DCNv2 semantics, zero padding OOB).

    Returns corner values as [M, Cin*K*K] slabs and the per-kernel-point bilinear
    weights / mask logits as compact [M, K*K] slabs (no Cin broadcast -- expansion
    happens inside the Pallas kernel to halve streamed HBM traffic)."""
    B, C, H, W = x.shape
    Hout, Wout = offset.shape[2], offset.shape[3]
    KK = K * K
    M = B * Hout * Wout

    kk = jnp.arange(KK)
    kh = (kk // K).astype(jnp.float32)
    kw = (kk % K).astype(jnp.float32)
    ho = jnp.arange(Hout, dtype=jnp.float32)
    wo = jnp.arange(Wout, dtype=jnp.float32)
    base_h = (ho * stride - pad)[:, None, None] + (kh * dil)[None, None, :]   # [Hout,1,KK]
    base_w = (wo * stride - pad)[None, :, None] + (kw * dil)[None, None, :]   # [1,Wout,KK]

    # offset channels: per kernel point k -> (2k) = dy, (2k+1) = dx  (DCN convention)
    off = offset.reshape(B, KK, 2, Hout, Wout)
    dy = off[:, :, 0].transpose(0, 2, 3, 1)            # [B, Hout, Wout, KK]
    dx = off[:, :, 1].transpose(0, 2, 3, 1)

    ph = base_h[None] + dy                              # [B, Hout, Wout, KK]
    pw = base_w[None] + dx

    h0f = jnp.floor(ph)
    w0f = jnp.floor(pw)
    lh = ph - h0f
    lw = pw - w0f
    h0 = h0f.astype(jnp.int32)
    w0 = w0f.astype(jnp.int32)
    h1 = h0 + 1
    w1 = w0 + 1

    def corner(hi, wi, weight):
        valid = ((hi >= 0) & (hi < H) & (wi >= 0) & (wi < W)).astype(jnp.float32)
        bw = (weight * valid).reshape(M, KK)                       # [M, KK], no Cin bcast
        idx = (jnp.clip(hi, 0, H - 1) * W + jnp.clip(wi, 0, W - 1)).reshape(B, -1)
        xf = x.reshape(B, C, H * W)
        v = jnp.take_along_axis(xf, idx[:, None, :], axis=2)       # [B, C, Ho*Wo*KK]
        v = v.reshape(B, C, Hout * Wout, KK).transpose(0, 2, 1, 3).reshape(M, C * KK)
        return v, bw

    v00, b00 = corner(h0, w0, (1.0 - lh) * (1.0 - lw))
    v01, b01 = corner(h0, w1, (1.0 - lh) * lw)
    v10, b10 = corner(h1, w0, lh * (1.0 - lw))
    v11, b11 = corner(h1, w1, lh * lw)

    ml = mask_logits.transpose(0, 2, 3, 1).reshape(M, KK)          # [M, KK]
    return (v00, v01, v10, v11), (b00, b01, b10, b11), ml


# ----------------------------------------------------------------------------- forward
def df_conv2d_forward(x, off_w, off_b, conv_w, *, ksize=3, stride=1, padding=1, dilation=1):
    """DFConv2d.forward (with_modulated_dcn=True, need_offset=False) on non-empty input."""
    # TODO(synk): the numel()==0 empty-tensor branch (_NewEmptyTensorOp) and the
    # non-modulated rotate2deformable/RETINANET path are not implemented.
    B, Cin, H, W = x.shape
    Cout = conv_w.shape[0]
    K = ksize

    # --- self.offset: standard conv, im2col rows + Pallas matmul(+bias) ---
    patches, Hout, Wout = _im2col(x, K, stride, padding, dilation)
    n_off = off_w.shape[0]                         # 27 = 18 offsets + 9 mask logits
    offset_mask = _pallas_matmul_bias(patches, off_w.reshape(n_off, Cin * K * K).T, off_b)
    offset_mask = offset_mask.reshape(B, Hout, Wout, n_off).transpose(0, 3, 1, 2)  # NCHW
    offset = offset_mask[:, :2 * K * K]            # first 18 channels
    mask_logits = offset_mask[:, -K * K:]          # last 9 channels (sigmoid in kernel)

    # --- deformable sampling glue (coords + gathers in JAX) ---
    corners, bweights, ml = _build_dcn_columns(x, offset, mask_logits, K, stride, padding, dilation)

    # --- ModulatedDeformConv hot path: combine + mask + matmul in Pallas ---
    out = _pallas_dcn_matmul(corners, bweights, ml,
                             conv_w.reshape(Cout, Cin * K * K).T, Cin)
    return out.reshape(B, Hout, Wout, Cout).transpose(0, 3, 1, 2)  # NCHW


# ----------------------------------------------------------------------------- pure-JAX reference (f32)
def _ref_forward(x, off_w, off_b, conv_w, *, ksize, stride, padding, dilation):
    B, Cin, H, W = x.shape
    Cout = conv_w.shape[0]
    K = ksize
    offset_mask = jax.lax.conv_general_dilated(
        x, off_w, window_strides=(stride, stride),
        padding=[(padding, padding), (padding, padding)],
        rhs_dilation=(dilation, dilation),
        dimension_numbers=("NCHW", "OIHW", "NCHW")) + off_b[None, :, None, None]
    offset = offset_mask[:, :2 * K * K]
    mask_logits = offset_mask[:, -K * K:]
    corners, bweights, ml = _build_dcn_columns(x, offset, mask_logits, K, stride, padding, dilation)

    def expand(b):                      # [M, KK] -> [M, Cin*KK], c-outer / k-inner
        return jnp.tile(b, (1, Cin))

    cols = sum(expand(w) * v for w, v in zip(bweights, corners)) * jax.nn.sigmoid(expand(ml))
    out = cols @ conv_w.reshape(Cout, Cin * K * K).T
    Hout, Wout = offset.shape[2], offset.shape[3]
    return out.reshape(B, Hout, Wout, Cout).transpose(0, 3, 1, 2)


# ----------------------------------------------------------------------------- main
if __name__ == "__main__":
    key = jax.random.PRNGKey(0)
    k1, k2, k3 = jax.random.split(key, 3)

    B, Cin, H, W = 2, 4, 16, 16
    Cout = 8
    K, stride, dilation = 3, 1, 1
    padding = dilation * (K - 1) // 2
    n_off = 27  # cfg.MODEL.DCN.OFFSET for modulated 3x3 DCN: 18 offsets + 9 masks

    x = jax.random.normal(k1, (B, Cin, H, W), jnp.float32)

    # deterministic parameter init (matches module shapes; kaiming_uniform(a=1) / uniform)
    fan_in = Cin * K * K
    bound = (3.0 / fan_in) ** 0.5
    off_w = jax.random.uniform(k2, (n_off, Cin, K, K), jnp.float32, -bound, bound)
    off_b = jnp.zeros((n_off,), jnp.float32)                  # constant_(0.0)
    stdv = 1.0 / (fan_in ** 0.5)
    conv_w = jax.random.uniform(k3, (Cout, Cin, K, K), jnp.float32, -stdv, stdv)

    out = df_conv2d_forward(x, off_w, off_b, conv_w,
                            ksize=K, stride=stride, padding=padding, dilation=dilation)
    out = jax.block_until_ready(out)
    assert out.shape == (B, Cout, H, W), out.shape

    ref = _ref_forward(x, off_w, off_b, conv_w,
                       ksize=K, stride=stride, padding=padding, dilation=dilation)
    ref = jax.block_until_ready(ref)
    # bf16 value/weight streams (f32 accumulation) -> compare at a bf16-appropriate tolerance
    err = float(jnp.max(jnp.abs(out - ref)))
    assert jnp.allclose(out, ref, atol=2e-2, rtol=2e-2), err

    print("KERNEL_OK")
</pallas_src>

<mosaic_0001>
module attributes {stable_mosaic.version = 11 : i64} {
  func.func @_mm_bias_kernel(%arg0: i32, %arg1: memref<256x36xbf16, #tpu.memory_space<vmem>>, %arg2: memref<36x128xbf16, #tpu.memory_space<vmem>>, %arg3: memref<1x128xf32, #tpu.memory_space<vmem>>, %arg4: memref<256x128xf32, #tpu.memory_space<vmem>>) attributes {dimension_semantics = [#tpu.dimension_semantics<parallel>], iteration_bounds = array<i64: 2>, scalar_prefetch = 0 : i64, scratch_operands = 0 : i64, tpu.core_type = #tpu.core_type<tc>, window_params = [{transform_indices = @transform_0, window_bounds = array<i64: 256, 36>}, {pipeline_mode = #tpu.pipeline_mode<synchronous>, transform_indices = @transform_1, window_bounds = array<i64: 36, 128>}, {pipeline_mode = #tpu.pipeline_mode<synchronous>, transform_indices = @transform_2, window_bounds = array<i64: 1, 128>}, {transform_indices = @transform_3, window_bounds = array<i64: 256, 128>}]} {
    %c0 = arith.constant 0 : index
    %c0_0 = arith.constant 0 : index
    %0 = vector.load %arg1[%c0, %c0_0] : memref<256x36xbf16, #tpu.memory_space<vmem>>, vector<256x36xbf16>
    %c0_1 = arith.constant 0 : index
    %c0_2 = arith.constant 0 : index
    %1 = vector.load %arg2[%c0_1, %c0_2] : memref<36x128xbf16, #tpu.memory_space<vmem>>, vector<36x128xbf16>
    %cst = arith.constant dense<0.000000e+00> : vector<256x128xf32>
    %2 = tpu.matmul %0, %1, %cst {dimension_numbers = #tpu.dot_dimension_numbers<[1], [0], [0], [1], [0, 0, 1, 1], [], []>} : vector<256x36xbf16>, vector<36x128xbf16>, vector<256x128xf32> -> vector<256x128xf32>
    %c0_3 = arith.constant 0 : index
    %c0_4 = arith.constant 0 : index
    %3 = vector.load %arg3[%c0_3, %c0_4] : memref<1x128xf32, #tpu.memory_space<vmem>>, vector<1x128xf32>
    %4 = vector.broadcast %3 : vector<1x128xf32> to vector<256x128xf32>
    %5 = arith.addf %2, %4 : vector<256x128xf32>
    %c0_5 = arith.constant 0 : index
    %c0_6 = arith.constant 0 : index
    %6 = vector.load %arg4[%c0_5, %c0_6] : memref<256x128xf32, #tpu.memory_space<vmem>>, vector<256x128xf32>
    tpu.vector_store %arg4[%c0_5, %c0_6], %5 {strides = array<i32>} : memref<256x128xf32, #tpu.memory_space<vmem>>, vector<256x128xf32>,
    return
  }
  func.func @transform_0(%arg0: i32) -> (i32, i32) {
    %c0_i32 = arith.constant 0 : i32
    %c0_i32_0 = arith.constant 0 : i32
    return %arg0, %c0_i32 : i32, i32
  }
  func.func @transform_1(%arg0: i32) -> (i32, i32) {
    %c0_i32 = arith.constant 0 : i32
    %c0_i32_0 = arith.constant 0 : i32
    %c0_i32_1 = arith.constant 0 : i32
    return %c0_i32, %c0_i32_0 : i32, i32
  }
  func.func @transform_2(%arg0: i32) -> (i32, i32) {
    %c0_i32 = arith.constant 0 : i32
    %c0_i32_0 = arith.constant 0 : i32
    %c0_i32_1 = arith.constant 0 : i32
    return %c0_i32, %c0_i32_0 : i32, i32
  }
  func.func @transform_3(%arg0: i32) -> (i32, i32) {
    %c0_i32 = arith.constant 0 : i32
    %c0_i32_0 = arith.constant 0 : i32
    return %arg0, %c0_i32 : i32, i32
  }
}

</mosaic_0001>

<bundles_post_ra>
// kernel: tpu_custom_call.1
= control target key start
LH: loop header
LB: loop body
LE: loop exit
PB: predicated region body
PF: predicated region fallthrough
CT: control target
= control target key end

     0   :  { %8 = vsyncpa [#allocation3], 0  ;;  %s1116_s0 = inlined_call_operand.vmem [shape: bf16[512,36], index: 0, kind: input, shape index: {}]   ;;  %s1117_s1 = inlined_call_operand.vmem [shape: bf16[36,128], index: 1, kind: input, shape index: {}]   ;;  %s1118_s2 = inlined_call_operand.vmem [shape: f32[1,128], index: 2, kind: input, shape index: {}]   ;;  %s1119_s3 = inlined_call_operand.hbm [shape: f32[512,128], index: 3, kind: output, shape index: {}]  }
   0x1   :  { %10 = vsyncpa [#allocation3 + $0x1], 0  ;;  %s895_s12 = smov 0   ;;  %s897_s13 = smov 0  }
   0x2   :  { %s899_s14 = smov 0   ;;  %s901_s15 = smov 0  }
   0x3 LB: > { %s916_s16 = sadd.s32 4294967295, %s870_s15   ;;  %s634_s17 = sadd.s32 4294967294, %s870_s15   ;;  %s870_s15 = sphi %s901_s15, %s1125_s15   ;;  %s866_s14 = sphi %s899_s14, %s1124_s14   ;;  %s862_s13 = sphi %s897_s13, %s1123_s13   ;;  %s858_s12 = sphi %s895_s12, %s1122_s12  }
   0x4   : > { %s920_s18 = sadd.s32 1, %s870_s15   ;;  %s91_s19 = sadd.s32 1, %s866_s14 }
   0x5   : > { %s88_s20 = ssub.s32 %s870_s15, %s920_s18  ;;  %p101_p0 = scmp.ne.s32.totalorder %s866_s14, %s862_s13 }
   0x6   : > { %p89_p1 = scmp.eq.s32.totalorder %s88_s20, 0  ;;  %p102_p2 = scmp.eq.s32.totalorder %s916_s16, 1 }
   0x7   : > { %p107_p3 = scmp.ne.s32.totalorder %s862_s13, %s858_s12  ;;  %p108_p4 = scmp.eq.s32.totalorder %s634_s17, 1 }
   0x8   : > { %s931_s21 = scalar_select %p89_p1, %s866_s14, %s91_s19  }
   0x9   : > { %p933_p5 = por %p102_p2, %p101_p0  ;;  %p937_p6 = por %p108_p4, %p107_p3 }
   0xa   : > { %p637_p7 = scmp.ge.s32.totalorder %s870_s15, 1  ;;  %p141_p8 = scmp.lt.s32.totalorder %s870_s15, 3 }
   0xc   : > { %p142_p9 = pnand %p637_p7, %p141_p8 }
   0xd   : > { %v789_v0 = vld [vmem:[%s1117_s1] sm:$0xff] (!%p142_p9)   ;;  %v790_v1 = vld [vmem:[%s1117_s1 + $0x8] sm:$0xff] (!%p142_p9)   ;;  %s639_s28 = sshll.u32 (!%p142_p9), %s916_s16, 5  ;;  %v791_v2 = vld [vmem:[%s1117_s1 + $0x10] ss:$0 sps:$4 sm:$0x33] (!%p142_p9)  }
   0xe   : > { %145 = sbr.rel (%p142_p9) target bundleno = 283 (0x11b), region = 32  ;;  %702 = vmatprep.subr.bf16.mxu0 (!%p142_p9), %v789_v0  ;;  %740 = vmatprep.subr.bf16.mxu1 (!%p142_p9), %v789_v0  ;;  %p166_p10 = scmp.lt.s32.totalorder (!%p142_p9), %s639_s28, 63  ;;  %vm361_vm0 = vcmask (!%p142_p9), 1041408   ;;  %vm312_vm1 = vcmask (!%p142_p9), 293888   ;;  %v996_v20 = vld [vmem:[%s1118_s2] ss:$0 sm:$0xff] (!%p142_p9) }
   0xf   : > { %703 = vmatpush3.bf16.msra.mxu0 (!%p142_p9), %v789_v0  ;;  %743 = vmatpush3.bf16.msra.mxu1 (!%p142_p9), %v789_v0  ;;  %v363_v3 = vsel (!%p142_p9), %vm361_vm0, %v791_v2, 0  ;;  %s162_s8 = sand.u32 (!%p142_p9), 1, %s862_s13   ;;  %s682_s19 = sshll.u32 (!%p142_p9), %s916_s16, 12 }
  0x10   : > { %704 = vmatprep.subr.bf16.mxu0 (!%p142_p9), %v790_v1  ;;  %741 = vmatprep.subr.bf16.mxu1 (!%p142_p9), %v790_v1  ;;  %s638_s9 = sshll.u32 (!%p142_p9), %s162_s8, 8  ;;  %s1061_s25 = scalar_lea.hbm (!%p142_p9), %s1119_s3, %s682_s19 }
  0x11   : > { %s1002_s17 = scalar_lea.vmem (!%p142_p9), [#allocation2], %s638_s9  ;;  %s1075_s26 = scalar_lea.sflag (!%p142_p9), [#allocation3], %s162_s8 }
  0x12   : > { %s572_s20 = sshll.u32 (!%p142_p9), %s1002_s17, 4  ;;  %s1063_s20 = int_to_ptr.vmem [resolvable:$true] %s572_s20 }
  0x13   : > { %705 = vmatpush3.bf16.msra.mxu0 (!%p142_p9), %v790_v1  ;;  %744 = vmatpush3.bf16.msra.mxu1 (!%p142_p9), %v790_v1  ;;  %s808_s27 = scalar_lea.vmem (!%p142_p9), %s1063_s20, 4096 }
  0x14   : > { %746 = vmatprep.subr.msk.bf16.mxu0 (!%p142_p9), %vm361_vm0, %v791_v2  ;;  %747 = vmatprep.subr.msk.bf16.mxu1 (!%p142_p9), %vm361_vm0, %v791_v2  ;;  %p809_p11 = scmp.ne.s32.totalorder (!%p142_p9), %s1063_s20, %s808_s27 }
  0x15   : > { %s1127_s28 = smov (!%p166_p10, %s639_s28), 63 }
  0x16   : > { %s640_s4 = sshll.u32 %s1127_s28, 2  ;;  %p810_p12 = pnand %p809_p11, %p933_p5 }
  0x17   : > { %s956_s7 = scalar_lea.vmem %s1116_s0, %s640_s4  ;;  %707 = vmatpush3.bf16.msra.mxu0 %v363_v3  ;;  %745 = vmatpush3.bf16.msra.mxu1 %v363_v3  ;;  %s872_s28 = smov [#allocation2]  }
  0x18   : > { %v792_v4 = vld [vmem:[%s956_s7] sm:$0xff]   ;;  %v794_v6 = vld [vmem:[%s956_s7 + $0x8] sm:$0xff]   ;;  %v796_v8 = vld [vmem:[%s956_s7 + $0x10] sm:$0xff]   ;;  %p811_p13 = pneg %p810_p12  ;;  %s812_s29 = sshll.u32 %s872_s28, 4  ;;  %s813_s29 = int_to_ptr.vmem [resolvable:$false] %s812_s29 }
  0x19   : > { %v793_v5 = vld [vmem:[%s956_s7 + $0x40] sm:$0xff]   ;;  %708 = vmatprep.mubr.msk.bf16.mxu0 %vm312_vm1, %v792_v4  ;;  %v795_v7 = vld [vmem:[%s956_s7 + $0x48] sm:$0xff]   ;;  %v797_v9 = vld [vmem:[%s956_s7 + $0x50] sm:$0xff]   ;;  %s814_s30 = scalar_lea.vmem %s813_s29, 8192  ;;  %p815_p0 = scmp.lt.s32.totalorder %s1063_s20, %s813_s29 }
  0x1a   : > { %724 = vmatprep.mubr.msk.bf16.mxu1 %vm312_vm1, %v793_v5  ;;  %709 = vmatmul.mubr.msk.bf16.vlgmr.msra.gmra.mrb[0].mxu0 %vm312_vm1, %v794_v6  ;;  %v798_v10 = vld [vmem:[%s956_s7 + $0x18] sm:$0xff]   ;;  %v800_v12 = vld [vmem:[%s956_s7 + $0x20] sm:$0xff]   ;;  %v802_v14 = vld [vmem:[%s956_s7 + $0x28] sm:$0xff]   ;;  %p816_p1 = scmp.lt.s32.totalorder %s814_s30, %s808_s27 }
  0x1b   : > { %725 = vmatmul.mubr.msk.bf16.vlgmr.msra.gmra.mrb[0].mxu1 %vm312_vm1, %v795_v7  ;;  %712 = vmatprep.mubr.msk.bf16.mxu0 %vm312_vm1, %v796_v8  ;;  %v799_v11 = vld [vmem:[%s956_s7 + $0x58] sm:$0xff]   ;;  %v801_v13 = vld [vmem:[%s956_s7 + $0x60] sm:$0xff]   ;;  %v803_v15 = vld [vmem:[%s956_s7 + $0x68] sm:$0xff]  }
  0x1c   : > { %728 = vmatprep.mubr.msk.bf16.mxu1 %vm312_vm1, %v797_v9  ;;  %v804_v16 = vld [vmem:[%s956_s7 + $0x30] sm:$0xff]   ;;  %v806_v18 = vld [vmem:[%s956_s7 + $0x38] sm:$0xff]   ;;  %p817_p2 = por %p816_p1, %p815_p0 }
  0x1d   : > { %v805_v17 = vld [vmem:[%s956_s7 + $0x70] sm:$0xff]   ;;  %v807_v19 = vld [vmem:[%s956_s7 + $0x78] sm:$0xff]  }
  0x1e   : > { %p818_p3 = pnand %p817_p2, %p811_p13 }
  0x22   : > { %713 = vmatmul.mubr.msk.bf16.gmra.mrb[4].mxu0 %vm312_vm1, %v798_v10 }
  0x23   : > { %729 = vmatmul.mubr.msk.bf16.gmra.mrb[4].mxu1 %vm312_vm1, %v799_v11  ;;  %716 = vmatprep.mubr.msk.bf16.mxu0 %vm312_vm1, %v800_v12 }
  0x24   : > { %732 = vmatprep.mubr.msk.bf16.mxu1 %vm312_vm1, %v801_v13 }
  0x2a   : > { %717 = vmatmul.mubr.msk.bf16.gmra.mrb[8].mxu0 %vm312_vm1, %v802_v14 }
  0x2b   : > { %733 = vmatmul.mubr.msk.bf16.gmra.mrb[8].mxu1 %vm312_vm1, %v803_v15  ;;  %720 = vmatprep.mubr.msk.bf16.mxu0 %vm312_vm1, %v804_v16 }
  0x2c   : > { %736 = vmatprep.mubr.msk.bf16.mxu1 %vm312_vm1, %v805_v17 }
  0x32   : > { %721 = vmatmul.mubr.msk.bf16.gmra.mrb[12].mxu0 %vm312_vm1, %v806_v18 }
  0x33   : > { %737 = vmatmul.mubr.msk.bf16.gmra.mrb[12].mxu1 %vm312_vm1, %v807_v19 }
  0xed   : > { %v710_v21 = vpop.f32.mrb[0].mxu0 }
  0xee   : > { %v726_v22 = vpop.f32.mrb[0].mxu1  ;;  %v408_v23 = vadd.f32 %v710_v21, %v996_v20  ;;  %v399_v25 = vpop.f32.mrb[1].mxu0 }
  0xef   : > { %v472_v24 = vadd.f32 %v726_v22, %v996_v20  ;;  %v463_v26 = vpop.f32.mrb[1].mxu1  ;;  %v400_v27 = vadd.f32 %v996_v20, %v399_v25  ;;  %v711_v29 = vpop.f32.mrb[2].mxu0 }
  0xf0   : > { %v464_v28 = vadd.f32 %v996_v20, %v463_v26  ;;  %v727_v30 = vpop.f32.mrb[2].mxu1  ;;  %528 = vst [vmem:[%s1002_s17 + $0x10] sm:$0xff] %v408_v23  ;;  %v411_v31 = vadd.f32 %v711_v29, %v996_v20  ;;  %v402_v33 = vpop.f32.mrb[3].mxu0 }
  0xf1   : > { %544 = vst [vmem:[%s1002_s17 + $0x90] sm:$0xff] %v472_v24  ;;  %v475_v32 = vadd.f32 %v727_v30, %v996_v20  ;;  %v466_v34 = vpop.f32.mrb[3].mxu1  ;;  %526 = vst [vmem:[%s1002_s17] sm:$0xff] %v400_v27  ;;  %v403_v35 = vadd.f32 %v996_v20, %v402_v33 }
  0xf2   : > { %542 = vst [vmem:[%s1002_s17 + $0x80] sm:$0xff] %v464_v28  ;;  %v467_v36 = vadd.f32 %v996_v20, %v466_v34  ;;  %529 = vst [vmem:[%s1002_s17 + $0x18] sm:$0xff] %v411_v31 }
  0xf3   : > { %545 = vst [vmem:[%s1002_s17 + $0x98] sm:$0xff] %v475_v32  ;;  %527 = vst [vmem:[%s1002_s17 + $0x8] sm:$0xff] %v403_v35 }
  0xf4   : > { %543 = vst [vmem:[%s1002_s17 + $0x88] sm:$0xff] %v467_v36 }
  0xf5   : > { %v714_v37 = vpop.f32.mrb[4].mxu0 }
  0xf6   : > { %v730_v38 = vpop.f32.mrb[4].mxu1  ;;  %v424_v39 = vadd.f32 %v714_v37, %v996_v20  ;;  %v415_v41 = vpop.f32.mrb[5].mxu0 }
  0xf7   : > { %v488_v40 = vadd.f32 %v730_v38, %v996_v20  ;;  %v479_v42 = vpop.f32.mrb[5].mxu1  ;;  %v416_v43 = vadd.f32 %v996_v20, %v415_v41  ;;  %v715_v45 = vpop.f32.mrb[6].mxu0 }
  0xf8   : > { %v480_v44 = vadd.f32 %v996_v20, %v479_v42  ;;  %v731_v46 = vpop.f32.mrb[6].mxu1  ;;  %532 = vst [vmem:[%s1002_s17 + $0x30] sm:$0xff] %v424_v39  ;;  %v427_v47 = vadd.f32 %v715_v45, %v996_v20  ;;  %v418_v49 = vpop.f32.mrb[7].mxu0 }
  0xf9   : > { %548 = vst [vmem:[%s1002_s17 + $0xb0] sm:$0xff] %v488_v40  ;;  %v491_v48 = vadd.f32 %v731_v46, %v996_v20  ;;  %v482_v50 = vpop.f32.mrb[7].mxu1  ;;  %530 = vst [vmem:[%s1002_s17 + $0x20] sm:$0xff] %v416_v43  ;;  %v419_v51 = vadd.f32 %v996_v20, %v418_v49 }
  0xfa   : > { %546 = vst [vmem:[%s1002_s17 + $0xa0] sm:$0xff] %v480_v44  ;;  %v483_v52 = vadd.f32 %v996_v20, %v482_v50  ;;  %533 = vst [vmem:[%s1002_s17 + $0x38] sm:$0xff] %v427_v47 }
  0xfb   : > { %549 = vst [vmem:[%s1002_s17 + $0xb8] sm:$0xff] %v491_v48  ;;  %531 = vst [vmem:[%s1002_s17 + $0x28] sm:$0xff] %v419_v51 }
  0xfc   : > { %547 = vst [vmem:[%s1002_s17 + $0xa8] sm:$0xff] %v483_v52 }
  0xfd   : > { %v718_v53 = vpop.f32.mrb[8].mxu0 }
  0xfe   : > { %v734_v54 = vpop.f32.mrb[8].mxu1  ;;  %v440_v55 = vadd.f32 %v718_v53, %v996_v20  ;;  %v431_v57 = vpop.f32.mrb[9].mxu0 }
  0xff   : > { %v504_v56 = vadd.f32 %v734_v54, %v996_v20  ;;  %v495_v58 = vpop.f32.mrb[9].mxu1  ;;  %v432_v59 = vadd.f32 %v996_v20, %v431_v57  ;;  %v719_v61 = vpop.f32.mrb[10].mxu0 }
 0x100   : > { %v496_v60 = vadd.f32 %v996_v20, %v495_v58  ;;  %v735_v62 = vpop.f32.mrb[10].mxu1  ;;  %536 = vst [vmem:[%s1002_s17 + $0x50] sm:$0xff] %v440_v55  ;;  %v443_v63 = vadd.f32 %v719_v61, %v996_v20  ;;  %v434_v1 = vpop.f32.mrb[11].mxu0 }
 0x101   : > { %552 = vst [vmem:[%s1002_s17 + $0xd0] sm:$0xff] %v504_v56  ;;  %v507_v0 = vadd.f32 %v735_v62, %v996_v20  ;;  %v498_v2 = vpop.f32.mrb[11].mxu1  ;;  %534 = vst [vmem:[%s1002_s17 + $0x40] sm:$0xff] %v432_v59  ;;  %v435_v3 = vadd.f32 %v996_v20, %v434_v1 }
 0x102   : > { %550 = vst [vmem:[%s1002_s17 + $0xc0] sm:$0xff] %v496_v60  ;;  %v499_v4 = vadd.f32 %v996_v20, %v498_v2  ;;  %537 = vst [vmem:[%s1002_s17 + $0x58] sm:$0xff] %v443_v63 }
 0x103   : > { %553 = vst [vmem:[%s1002_s17 + $0xd8] sm:$0xff] %v507_v0  ;;  %535 = vst [vmem:[%s1002_s17 + $0x48] sm:$0xff] %v435_v3 }
 0x104   : > { %551 = vst [vmem:[%s1002_s17 + $0xc8] sm:$0xff] %v499_v4 }
 0x105   : > { %v722_v5 = vpop.f32.mrb[12].mxu0 }
 0x106   : > { %v738_v6 = vpop.f32.mrb[12].mxu1  ;;  %v456_v7 = vadd.f32 %v722_v5, %v996_v20  ;;  %v447_v9 = vpop.f32.mrb[13].mxu0 }
 0x107   : > { %v520_v8 = vadd.f32 %v738_v6, %v996_v20  ;;  %v511_v10 = vpop.f32.mrb[13].mxu1  ;;  %v448_v11 = vadd.f32 %v996_v20, %v447_v9  ;;  %v723_v13 = vpop.f32.mrb[14].mxu0 }
 0x108   : > { %v512_v12 = vadd.f32 %v996_v20, %v511_v10  ;;  %v739_v14 = vpop.f32.mrb[14].mxu1  ;;  %540 = vst [vmem:[%s1002_s17 + $0x70] sm:$0xff] %v456_v7  ;;  %v459_v15 = vadd.f32 %v723_v13, %v996_v20  ;;  %v450_v17 = vpop.f32.mrb[15].mxu0 }
 0x109   : > { %556 = vst [vmem:[%s1002_s17 + $0xf0] sm:$0xff] %v520_v8  ;;  %v523_v16 = vadd.f32 %v739_v14, %v996_v20  ;;  %v514_v18 = vpop.f32.mrb[15].mxu1  ;;  %538 = vst [vmem:[%s1002_s17 + $0x60] sm:$0xff] %v448_v11  ;;  %v451_v19 = vadd.f32 %v996_v20, %v450_v17 }
 0x10a   : > { %554 = vst [vmem:[%s1002_s17 + $0xe0] sm:$0xff] %v512_v12  ;;  %v515_v21 = vadd.f32 %v996_v20, %v514_v18  ;;  %541 = vst [vmem:[%s1002_s17 + $0x78] sm:$0xff] %v459_v15 }
 0x10b   : > { %557 = vst [vmem:[%s1002_s17 + $0xf8] sm:$0xff] %v523_v16  ;;  %539 = vst [vmem:[%s1002_s17 + $0x68] sm:$0xff] %v451_v19 }
 0x10c   : > { %555 = vst [vmem:[%s1002_s17 + $0xe8] sm:$0xff] %v515_v21 }
 0x10d   : > { %821 = shalt.err (!%p818_p3)
}
 0x10e   : > { %s822_s4 = scalar_lea.hbm %s1061_s25, 4096  ;;  %s826_s7 = scalar_lea.hbm %s1119_s3, 8192 }
 0x10f   : > { %p823_p4 = scmp.ne.s32.totalorder %s1061_s25, %s822_s4  ;;  %p827_p9 = scmp.lt.u32.totalorder %s1061_s25, %s1119_s3 }
 0x110   : > { %p828_p10 = scmp.lt.u32.totalorder %s826_s7, %s822_s4  ;;  %p830_p12 = scmp.lt.u32.totalorder %s822_s4, %s1061_s25 }
 0x111   : > { %p824_p7 = pnand %p823_p4, %p933_p5 }
 0x112   : > { %p829_p11 = por %p828_p10, %p827_p9 }
 0x113   : > { %p825_p8 = pneg %p824_p7 }
 0x114   : > { %p831_p13 = por %p830_p12, %p829_p11 }
 0x116   : > { %p832_p0 = pnand %p831_p13, %p825_p8 }
 0x118   : > { %835 = shalt.err (!%p832_p0)
}
 0x119   : > { %s873_s10 = smov 128   ;;  %s874_s11 = smov 8  }
 0x11a   : > { %748 = dma.vmem_to_hbm [thread:$0]  (%p933_p5), %s1063_s20, 4096, %s1061_s25, %s1075_s26, %s873_s10, %s873_s10, %s874_s11  }
 0x11b PF: > { %p754_p1 = scmp.ge.s32.totalorder %s870_s15, 2  ;;  %s587_s17 = sand.u32 1, %s858_s12  }
 0x11c   : > { %s588_s19 = scalar_lea.sflag [#allocation3], %s587_s17 }
 0x11d   : > { %p751_p2 = pnand %p754_p1, %p937_p6 }
 0x11f   : > { %853 = dma.done.wait (!%p751_p2), %s588_s19, 4096  }
 0x120   : > { %855 = vsyncadd (!%p751_p2), %s588_s19, 4294963200  ;;  %p13_p3 = scmp.ge.s32.totalorder %s920_s18, 4   ;;  %s1122_s12 = smov %s862_s13 }
 0x121   : > { %s1123_s13 = smov %s866_s14  ;;  %s1124_s14 = smov %s931_s21 }
 0x122   : > { %s1125_s15 = smov %s920_s18  ;;  %15 = sbr.rel (!%p13_p3) target bundleno = 3 (0x3), region = 67 }
 0x129   :  { %593 = vsyncpa [#allocation3], 1 }
 0x12a   :  { %595 = vsyncpa [#allocation3 + $0x1], 1 }

</bundles_post_ra>
